<compile_context>
chip_gen: v5e
topology: v5e:2x2
jax: 0.10.0
libtpu: 0.0.40
codegen_flags: <defaults>
</compile_context>

<pallas_src>
import functools

import jax
import jax.numpy as jnp
from jax.experimental import pallas as pl
from jax.experimental.pallas import tpu as pltpu


LN_EPS = 1e-12  # matches nn.LayerNorm(output_feat_size, eps=1e-12)


def _round_up(a: int, b: int) -> int:
    return ((a + b - 1) // b) * b


def _cdiv(a: int, b: int) -> int:
    return -(-a // b)


def _layernorm_rows(y, gamma, beta, c_real: int, c_pad: int):
    """LayerNorm over the last dim of an f32 (TM, c_pad) tile.

    Columns [c_real:c_pad] of `y` are exact zeros (zero weight columns + zero
    bias), so the row sum over the padded width equals the sum over the real
    columns.  The two-pass variance needs a correction for those padded
    columns (each contributes (0 - mean)^2); we subtract that analytically
    (exact) instead of materializing a lane mask.
    """
    inv_c = 1.0 / float(c_real)
    n_pad = float(c_pad - c_real)
    mean = jnp.sum(y, axis=-1, keepdims=True) * inv_c
    d = y - mean
    sumsq = jnp.sum(d * d, axis=-1, keepdims=True)
    var = jnp.maximum((sumsq - n_pad * (mean * mean)) * inv_c, 0.0)
    # Rows that are pure padding (Mp > M) can hit small var -> large rsqrt;
    # the result stays finite, is scaled by gamma, and is sliced off in the
    # wrapper.  Keep row/lane padding zero-valued.
    y_hat = d * jax.lax.rsqrt(var + LN_EPS)
    return y_hat * gamma + beta


def _resizer_kernel(x_ref, w_ref, b_ref, g_ref, be_ref, o_ref, *, c_real, c_pad):
    # Fused: linear (MXU, f32 accumulation) + bias + LayerNorm(last dim).
    y = jnp.dot(x_ref[...], w_ref[...], preferred_element_type=jnp.float32)
    y = y + b_ref[...]                                  # bias already f32, (1, c_pad)
    out = _layernorm_rows(y, g_ref[...], be_ref[...], c_real, c_pad)
    o_ref[...] = out.astype(o_ref.dtype)


def _resizer_kernel_ktiled(x_ref, w_ref, b_ref, g_ref, be_ref, o_ref, acc_ref,
                           *, c_real, c_pad):
    # Streamed-W path: accumulate partial matmuls over the K grid axis,
    # do bias + LayerNorm once on the last K step.
    k = pl.program_id(1)

    @pl.when(k == 0)
    def _():
        acc_ref[...] = jnp.zeros_like(acc_ref)

    acc_ref[...] += jnp.dot(x_ref[...], w_ref[...],
                            preferred_element_type=jnp.float32)

    @pl.when(k == pl.num_programs(1) - 1)
    def _():
        y = acc_ref[...] + b_ref[...]
        out = _layernorm_rows(y, g_ref[...], be_ref[...], c_real, c_pad)
        o_ref[...] = out.astype(o_ref.dtype)


def _vmem_cap_bytes() -> int:
    """~80% of this generation's VMEM; conservative fallback if unqueryable."""
    try:
        info = pltpu.get_tpu_info()
        cap = int(getattr(info, "vmem_capacity_bytes", 0) or 0)
        if cap > 0:
            return int(0.8 * cap)
    except Exception:
        pass
    # Safe under v7x's 64 MiB/TC; v5e/v6e (128 MiB) just get a smaller tile.
    return 48 * 1024 * 1024


def _vmem_footprint(tm, k_width, c2p, x_item, w_item, o_item, *,
                    resident_w, c1p, tk, n_xbuf):
    f = n_xbuf * tm * k_width * x_item        # pipelined x tiles
    f += 2 * tm * c2p * o_item                # double-buffered out tiles
    if resident_w:
        f += c1p * c2p * w_item               # single-buffered resident W
    else:
        f += 2 * tk * c2p * w_item            # double-buffered W slabs
        f += tm * c2p * 4                     # f32 accumulator scratch
    f += 3 * c2p * 4                          # bias / gamma / beta (f32, resident)
    f += 4 * tm * c2p * 4                     # f32 LN temporaries (y, d, d*d, out)
    return f


def feature_resizer(x, w, b, gamma, beta, *, tile_m: int = None,
                    k_tile: int = None, mxu_bf16: bool = False,
                    x_buffers: int = 2):
    """FeatureResizer forward: LayerNorm(x @ w + b), eps=1e-12.

    x: (B, N, C1); w: (C1, C2); b/gamma/beta: (C2,).  Returns (B, N, C2).
    tile_m:    row-tile size (auto-picked from the VMEM budget when None)
    k_tile:    force K(=C1) tiling with this tile size (auto when None)
    mxu_bf16:  opt-in bf16 MXU feed when inputs are f32 (f32 accumulation kept)
    x_buffers: pipeline depth for the x stream (3 if the DMA is exposed)
    """
    B, N, C1 = x.shape
    C2 = w.shape[1]
    M = B * N
    out_dtype = x.dtype

    if mxu_bf16 and x.dtype == jnp.float32:
        x = x.astype(jnp.bfloat16)
        w = w.astype(jnp.bfloat16)

    # Params are tiny: hand them to the kernel already in f32 (no per-step casts).
    b = b.astype(jnp.float32)
    gamma = gamma.astype(jnp.float32)
    beta = beta.astype(jnp.float32)

    x_item = x.dtype.itemsize
    w_item = w.dtype.itemsize
    o_item = jnp.dtype(out_dtype).itemsize

    # ---- lane-dense output: pad C2 to a multiple of 128 (256 when cheap) ----
    C2p = _round_up(C2, 128)
    if C2 > 128 and C2p % 256 != 0 and (_round_up(C2, 256) - C2) * 8 <= C2:
        C2p = _round_up(C2, 256)              # full-width v6e/v7x MXU passes

    # ---- contraction dim: pad C1 to a multiple of 128 (dense x DMA / MXU K) ----
    C1p = _round_up(C1, 128)

    vmem_cap = _vmem_cap_bytes()

    # ---- resident W vs. K-tiled (streamed) W ----
    if k_tile is not None:
        resident_w = False
        tk = _round_up(min(k_tile, C1p), 128)
        C1p = _round_up(C1p, tk)
        nk = C1p // tk
    else:
        resident_w = (C1p * C2p * w_item) <= int(0.4 * vmem_cap)
        if resident_w:
            tk, nk = C1p, 1
        else:
            nk = _cdiv(C1p, 512)
            tk = _round_up(_cdiv(C1p, nk), 128)
            C1p = nk * tk
    k_width = C1p if resident_w else tk

    # ---- row tiling: biggest tile whose footprint fits the VMEM budget ----
    m_cap = max(16, _round_up(M, 16))
    if tile_m is None:
        tile_m_eff = 16
        for cand in (1024, 768, 512, 384, 256, 128, 64, 32, 16):
            if cand > m_cap:
                continue
            if _vmem_footprint(cand, k_width, C2p, x_item, w_item, o_item,
                               resident_w=resident_w, c1p=C1p, tk=tk,
                               n_xbuf=x_buffers) <= vmem_cap:
                tile_m_eff = cand
                break
    else:
        tile_m_eff = max(16, _round_up(min(tile_m, m_cap), 16))
    Mp = _round_up(M, tile_m_eff)

    # ---- zero padding (exact: zero rows/cols contribute nothing) ----
    x2d = x.reshape(M, C1)
    pad_m, pad_k, pad_c = Mp - M, C1p - C1, C2p - C2
    if pad_m or pad_k:
        x2d = jnp.pad(x2d, ((0, pad_m), (0, pad_k)))
    if pad_k or pad_c:
        w = jnp.pad(w, ((0, pad_k), (0, pad_c)))
    if pad_c:
        b = jnp.pad(b, (0, pad_c))
        gamma = jnp.pad(gamma, (0, pad_c))
        beta = jnp.pad(beta, (0, pad_c))

    b2d = b.reshape(1, C2p)
    g2d = gamma.reshape(1, C2p)
    be2d = beta.reshape(1, C2p)

    footprint = _vmem_footprint(tile_m_eff, k_width, C2p, x_item, w_item, o_item,
                                resident_w=resident_w, c1p=C1p, tk=tk,
                                n_xbuf=x_buffers)
    vmem_limit = min(max(int(1.25 * footprint) + (4 << 20), 32 << 20), vmem_cap)

    x_pipe = {} if x_buffers == 2 else {"pipeline_mode": pl.Buffered(x_buffers)}
    const_pipe = {"pipeline_mode": pl.Buffered(1)}   # resident, single-buffered

    if resident_w:
        kernel = functools.partial(_resizer_kernel, c_real=C2, c_pad=C2p)
        out2d = pl.pallas_call(
            kernel,
            out_shape=jax.ShapeDtypeStruct((Mp, C2p), out_dtype),
            grid_spec=pltpu.PrefetchScalarGridSpec(
                num_scalar_prefetch=0,
                grid=(Mp // tile_m_eff,),
                in_specs=[
                    pl.BlockSpec((tile_m_eff, C1p), lambda i: (i, 0), **x_pipe),
                    pl.BlockSpec((C1p, C2p), lambda i: (0, 0), **const_pipe),
                    pl.BlockSpec((1, C2p), lambda i: (0, 0), **const_pipe),
                    pl.BlockSpec((1, C2p), lambda i: (0, 0), **const_pipe),
                    pl.BlockSpec((1, C2p), lambda i: (0, 0), **const_pipe),
                ],
                out_specs=pl.BlockSpec((tile_m_eff, C2p), lambda i: (i, 0)),
            ),
            compiler_params=pltpu.CompilerParams(
                dimension_semantics=("parallel",),     # megacore-shard the row axis
                vmem_limit_bytes=vmem_limit,
            ),
        )(x2d, w, b2d, g2d, be2d)
    else:
        kernel = functools.partial(_resizer_kernel_ktiled, c_real=C2, c_pad=C2p)
        out2d = pl.pallas_call(
            kernel,
            out_shape=jax.ShapeDtypeStruct((Mp, C2p), out_dtype),
            grid_spec=pltpu.PrefetchScalarGridSpec(
                num_scalar_prefetch=0,
                grid=(Mp // tile_m_eff, nk),
                in_specs=[
                    pl.BlockSpec((tile_m_eff, tk), lambda i, k: (i, k), **x_pipe),
                    pl.BlockSpec((tk, C2p), lambda i, k: (k, 0)),
                    pl.BlockSpec((1, C2p), lambda i, k: (0, 0), **const_pipe),
                    pl.BlockSpec((1, C2p), lambda i, k: (0, 0), **const_pipe),
                    pl.BlockSpec((1, C2p), lambda i, k: (0, 0), **const_pipe),
                ],
                out_specs=pl.BlockSpec((tile_m_eff, C2p), lambda i, k: (i, 0)),
                scratch_shapes=[pltpu.VMEM((tile_m_eff, C2p), jnp.float32)],
            ),
            compiler_params=pltpu.CompilerParams(
                dimension_semantics=("parallel", "arbitrary"),
                vmem_limit_bytes=vmem_limit,
            ),
        )(x2d, w, b2d, g2d, be2d)

    # Strip row and lane padding.
    return out2d[:M, :C2].reshape(B, N, C2)


def feature_resizer_ref(x, w, b, gamma, beta):
    """Plain-JAX reference for correctness checking."""
    y = jnp.einsum("bnc,cd->bnd", x.astype(jnp.float32), w.astype(jnp.float32)) + b
    mean = jnp.mean(y, axis=-1, keepdims=True)
    var = jnp.mean((y - mean) ** 2, axis=-1, keepdims=True)
    return ((y - mean) / jnp.sqrt(var + LN_EPS)) * gamma + beta


if __name__ == "__main__":
    def make_inputs(key, B, N, C1, C2):
        kx, kw, kb = jax.random.split(key, 3)
        x = jax.random.normal(kx, (B, N, C1), dtype=jnp.float32)
        bound = 1.0 / (C1 ** 0.5)
        w = jax.random.uniform(kw, (C1, C2), minval=-bound, maxval=bound,
                               dtype=jnp.float32)
        b = jax.random.uniform(kb, (C2,), minval=-bound, maxval=bound,
                               dtype=jnp.float32)
        gamma = jnp.ones((C2,), dtype=jnp.float32)   # LayerNorm default init
        beta = jnp.zeros((C2,), dtype=jnp.float32)
        return x, w, b, gamma, beta

    # 1) default (resident-W) path at small module-like shapes
    B, N, C1, C2 = 2, 8, 32, 64
    x, w, b, gamma, beta = make_inputs(jax.random.PRNGKey(0), B, N, C1, C2)
    out = jax.block_until_ready(feature_resizer(x, w, b, gamma, beta))
    ref = feature_resizer_ref(x, w, b, gamma, beta)
    assert out.shape == (B, N, C2)
    assert jnp.allclose(out, ref, atol=1e-4, rtol=1e-4), "resident-W path mismatch"

    # 2) forced K-tiled (streamed-W, accumulator) path: several k steps
    x2, w2, b2, g2, be2 = make_inputs(jax.random.PRNGKey(1), 2, 8, 384, 64)
    out2 = jax.block_until_ready(feature_resizer(x2, w2, b2, g2, be2, k_tile=128))
    ref2 = feature_resizer_ref(x2, w2, b2, g2, be2)
    assert jnp.allclose(out2, ref2, atol=1e-4, rtol=1e-4), "K-tiled path mismatch"

    # 3) opt-in bf16 MXU feed (f32 accumulation) — compare vs. bf16-cast reference
    out3 = jax.block_until_ready(feature_resizer(x, w, b, gamma, beta, mxu_bf16=True))
    ref3 = feature_resizer_ref(x.astype(jnp.bfloat16).astype(jnp.float32),
                               w.astype(jnp.bfloat16).astype(jnp.float32),
                               b, gamma, beta)
    assert jnp.allclose(out3, ref3, atol=2e-2, rtol=2e-2), "bf16 path mismatch"

    # TODO(synk): self.dropout is constructed in the PyTorch module but never
    # applied in forward(); intentionally omitted here.
    print("KERNEL_OK")
</pallas_src>

<mosaic_0001>
module attributes {stable_mosaic.version = 11 : i64} {
  func.func @_resizer_kernel(%arg0: i32, %arg1: memref<16x128xf32, #tpu.memory_space<vmem>>, %arg2: memref<128x128xf32, #tpu.memory_space<vmem>>, %arg3: memref<1x128xf32, #tpu.memory_space<vmem>>, %arg4: memref<1x128xf32, #tpu.memory_space<vmem>>, %arg5: memref<1x128xf32, #tpu.memory_space<vmem>>, %arg6: memref<16x128xf32, #tpu.memory_space<vmem>>) attributes {dimension_semantics = [#tpu.dimension_semantics<parallel>], iteration_bounds = array<i64: 1>, scalar_prefetch = 0 : i64, scratch_operands = 0 : i64, tpu.core_type = #tpu.core_type<tc>, window_params = [{transform_indices = @transform_0, window_bounds = array<i64: 16, 128>}, {pipeline_mode = #tpu.pipeline_mode<synchronous>, transform_indices = @transform_1, window_bounds = array<i64: 128, 128>}, {pipeline_mode = #tpu.pipeline_mode<synchronous>, transform_indices = @transform_2, window_bounds = array<i64: 1, 128>}, {pipeline_mode = #tpu.pipeline_mode<synchronous>, transform_indices = @transform_3, window_bounds = array<i64: 1, 128>}, {pipeline_mode = #tpu.pipeline_mode<synchronous>, transform_indices = @transform_4, window_bounds = array<i64: 1, 128>}, {transform_indices = @transform_5, window_bounds = array<i64: 16, 128>}]} {
    %c0 = arith.constant 0 : index
    %c0_0 = arith.constant 0 : index
    %0 = vector.load %arg1[%c0, %c0_0] : memref<16x128xf32, #tpu.memory_space<vmem>>, vector<16x128xf32>
    %c0_1 = arith.constant 0 : index
    %c0_2 = arith.constant 0 : index
    %1 = vector.load %arg2[%c0_1, %c0_2] : memref<128x128xf32, #tpu.memory_space<vmem>>, vector<128x128xf32>
    %cst = arith.constant dense<0.000000e+00> : vector<16x128xf32>
    %2 = tpu.matmul %0, %1, %cst {dimension_numbers = #tpu.dot_dimension_numbers<[1], [0], [0], [1], [0, 0, 1, 1], [], []>} : vector<16x128xf32>, vector<128x128xf32>, vector<16x128xf32> -> vector<16x128xf32>
    %c0_3 = arith.constant 0 : index
    %c0_4 = arith.constant 0 : index
    %3 = vector.load %arg3[%c0_3, %c0_4] : memref<1x128xf32, #tpu.memory_space<vmem>>, vector<1x128xf32>
    %4 = vector.broadcast %3 : vector<1x128xf32> to vector<16x128xf32>
    %5 = arith.addf %2, %4 : vector<16x128xf32>
    %c0_5 = arith.constant 0 : index
    %c0_6 = arith.constant 0 : index
    %6 = vector.load %arg4[%c0_5, %c0_6] : memref<1x128xf32, #tpu.memory_space<vmem>>, vector<1x128xf32>
    %c0_7 = arith.constant 0 : index
    %c0_8 = arith.constant 0 : index
    %7 = vector.load %arg5[%c0_7, %c0_8] : memref<1x128xf32, #tpu.memory_space<vmem>>, vector<1x128xf32>
    %cst_9 = arith.constant dense<0.000000e+00> : vector<16xf32>
    %8 = vector.multi_reduction <add>, %5, %cst_9 [1] : vector<16x128xf32> to vector<16xf32>
    %9 = vector.shape_cast %8 : vector<16xf32> to vector<16x1xf32>
    %cst_10 = arith.constant 1.562500e-02 : f32
    %10 = vector.broadcast %cst_10 : f32 to vector<16x1xf32>
    %11 = arith.mulf %9, %10 : vector<16x1xf32>
    %12 = vector.broadcast %11 : vector<16x1xf32> to vector<16x128xf32>
    %13 = arith.subf %5, %12 : vector<16x128xf32>
    %14 = arith.mulf %13, %13 : vector<16x128xf32>
    %cst_11 = arith.constant dense<0.000000e+00> : vector<16xf32>
    %15 = vector.multi_reduction <add>, %14, %cst_11 [1] : vector<16x128xf32> to vector<16xf32>
    %16 = vector.shape_cast %15 : vector<16xf32> to vector<16x1xf32>
    %17 = arith.mulf %11, %11 : vector<16x1xf32>
    %cst_12 = arith.constant 6.400000e+01 : f32
    %18 = vector.broadcast %cst_12 : f32 to vector<16x1xf32>
    %19 = arith.mulf %18, %17 : vector<16x1xf32>
    %20 = arith.subf %16, %19 : vector<16x1xf32>
    %cst_13 = arith.constant 1.562500e-02 : f32
    %21 = vector.broadcast %cst_13 : f32 to vector<16x1xf32>
    %22 = arith.mulf %20, %21 : vector<16x1xf32>
    %cst_14 = arith.constant 0.000000e+00 : f32
    %23 = vector.broadcast %cst_14 : f32 to vector<16x1xf32>
    %24 = arith.maximumf %22, %23 : vector<16x1xf32>
    %cst_15 = arith.constant 9.99999996E-13 : f32
    %25 = vector.broadcast %cst_15 : f32 to vector<16x1xf32>
    %26 = arith.addf %24, %25 : vector<16x1xf32>
    %27 = math.rsqrt %26 : vector<16x1xf32>
    %28 = vector.broadcast %27 : vector<16x1xf32> to vector<16x128xf32>
    %29 = arith.mulf %13, %28 : vector<16x128xf32>
    %30 = vector.broadcast %6 : vector<1x128xf32> to vector<16x128xf32>
    %31 = arith.mulf %29, %30 : vector<16x128xf32>
    %32 = vector.broadcast %7 : vector<1x128xf32> to vector<16x128xf32>
    %33 = arith.addf %31, %32 : vector<16x128xf32>
    %c0_16 = arith.constant 0 : index
    %c0_17 = arith.constant 0 : index
    %34 = vector.load %arg6[%c0_16, %c0_17] : memref<16x128xf32, #tpu.memory_space<vmem>>, vector<16x128xf32>
    tpu.vector_store %arg6[%c0_16, %c0_17], %33 {strides = array<i32>} : memref<16x128xf32, #tpu.memory_space<vmem>>, vector<16x128xf32>,
    return
  }
  func.func @transform_0(%arg0: i32) -> (i32, i32) {
    %c0_i32 = arith.constant 0 : i32
    %c0_i32_0 = arith.constant 0 : i32
    return %arg0, %c0_i32 : i32, i32
  }
  func.func @transform_1(%arg0: i32) -> (i32, i32) {
    %c0_i32 = arith.constant 0 : i32
    %c0_i32_0 = arith.constant 0 : i32
    %c0_i32_1 = arith.constant 0 : i32
    return %c0_i32, %c0_i32_0 : i32, i32
  }
  func.func @transform_2(%arg0: i32) -> (i32, i32) {
    %c0_i32 = arith.constant 0 : i32
    %c0_i32_0 = arith.constant 0 : i32
    %c0_i32_1 = arith.constant 0 : i32
    return %c0_i32, %c0_i32_0 : i32, i32
  }
  func.func @transform_3(%arg0: i32) -> (i32, i32) {
    %c0_i32 = arith.constant 0 : i32
    %c0_i32_0 = arith.constant 0 : i32
    %c0_i32_1 = arith.constant 0 : i32
    return %c0_i32, %c0_i32_0 : i32, i32
  }
  func.func @transform_4(%arg0: i32) -> (i32, i32) {
    %c0_i32 = arith.constant 0 : i32
    %c0_i32_0 = arith.constant 0 : i32
    %c0_i32_1 = arith.constant 0 : i32
    return %c0_i32, %c0_i32_0 : i32, i32
  }
  func.func @transform_5(%arg0: i32) -> (i32, i32) {
    %c0_i32 = arith.constant 0 : i32
    %c0_i32_0 = arith.constant 0 : i32
    return %arg0, %c0_i32 : i32, i32
  }
}

</mosaic_0001>

<bundles_post_ra>
// kernel: tpu_custom_call.1
= control target key start
LH: loop header
LB: loop body
LE: loop exit
PB: predicated region body
PF: predicated region fallthrough
CT: control target
= control target key end

     0   :  { %10 = vsyncpa [#allocation3], 0  ;;  %s348_s0 = inlined_call_operand.hbm [shape: f32[16,128], index: 0, kind: input, shape index: {}]   ;;  %s349_s1 = inlined_call_operand.hbm [shape: f32[128,128], index: 1, kind: input, shape index: {}]   ;;  %s350_s2 = inlined_call_operand.vmem [shape: f32[1,128], index: 2, kind: input, shape index: {}]   ;;  %s351_s3 = inlined_call_operand.vmem [shape: f32[1,128], index: 3, kind: input, shape index: {}]   ;;  %s352_s4 = inlined_call_operand.vmem [shape: f32[1,128], index: 4, kind: input, shape index: {}]   ;;  %s353_s5 = inlined_call_operand.hbm [shape: f32[16,128], index: 5, kind: output, shape index: {}]  }
   0x1   :  { %11 = vsyncpa [#allocation6], 0 }
   0x2   :  { %12 = vsyncpa [#allocation4], 0  ;;  %s17_s20 = sshll.u32 %s348_s0, 4  ;;  %s286_s21 = smov [#allocation2]   ;;  %s18_s20 = int_to_ptr.hbm [resolvable:$true] %s17_s20 }
   0x3   :  { %s19_s22 = sshll.u32 %s286_s21, 4  ;;  %s30_s25 = sshll.u32 %s349_s1, 4  ;;  %s20_s22 = int_to_ptr.vmem [resolvable:$true] %s19_s22  ;;  %s31_s25 = int_to_ptr.hbm [resolvable:$true] %s30_s25 }
   0x4   :  { %s287_s26 = smov 128   ;;  %s288_s27 = smov 8  }
   0x5   :  { %25 = dma.hbm_to_vmem [thread:$0]  %s18_s20, 256, %s20_s22, [#allocation3], %s287_s26, %s287_s26, %s288_s27  }
   0x6   :  { %s289_s28 = smov [#allocation5]  }
   0x7   :  { %s32_s29 = sshll.u32 %s289_s28, 4  ;;  %s33_s29 = int_to_ptr.vmem [resolvable:$true] %s32_s29 }
   0x8   :  { %38 = dma.hbm_to_vmem [thread:$0]  %s31_s25, 2048, %s33_s29, [#allocation6], %s287_s26, %s287_s26, %s288_s27  }
   0x9   :  { %280 = dma.done.wait [#allocation3], 256  }
   0xa   :  { %281 = vsyncadd [#allocation3], 4294967040 }
   0xb   :  { %282 = dma.done.wait [#allocation6], 2048  }
   0xc   :  { %283 = vsyncadd [#allocation6], 4294965248  ;;  %v70_v0 = vld [vmem:[#allocation5 + $0x78] sm:$0xff]  ;;  %v69_v1 = vld [vmem:[#allocation5 + $0x70] sm:$0xff]  ;;  %s290_s8 = smov [#allocation7]   ;;  %s166_s11 = sshll.u32 %s353_s5, 4  ;;  %s167_s11 = int_to_ptr.hbm [resolvable:$true] %s166_s11 }
   0xd   :  { %75 = vmatpush.msra.mxu0 %v70_v0  ;;  %180 = vmatpush.msra.mxu1 %v70_v0  ;;  %v68_v2 = vld [vmem:[#allocation5 + $0x68] sm:$0xff]  ;;  %v67_v3 = vld [vmem:[#allocation5 + $0x60] sm:$0xff]  ;;  %v66_v4 = vld [vmem:[#allocation5 + $0x58] sm:$0xff] }
   0xe   :  { %v65_v5 = vld [vmem:[#allocation5 + $0x50] sm:$0xff]  ;;  %v64_v6 = vld [vmem:[#allocation5 + $0x48] sm:$0xff]  ;;  %v63_v7 = vld [vmem:[#allocation5 + $0x40] sm:$0xff] }
   0xf   :  { %76 = vmatpush.msra.mxu0 %v69_v1  ;;  %181 = vmatpush.msra.mxu1 %v69_v1  ;;  %v62_v8 = vld [vmem:[#allocation5 + $0x38] sm:$0xff]  ;;  %v61_v9 = vld [vmem:[#allocation5 + $0x30] sm:$0xff]  ;;  %v60_v10 = vld [vmem:[#allocation5 + $0x28] sm:$0xff] }
  0x10   :  { %v59_v11 = vld [vmem:[#allocation5 + $0x20] sm:$0xff]  ;;  %v58_v12 = vld [vmem:[#allocation5 + $0x18] sm:$0xff]  ;;  %v57_v13 = vld [vmem:[#allocation5 + $0x10] sm:$0xff] }
  0x11   :  { %77 = vmatpush.msra.mxu0 %v68_v2  ;;  %182 = vmatpush.msra.mxu1 %v68_v2  ;;  %v56_v14 = vld [vmem:[#allocation5 + $0x8] sm:$0xff]  ;;  %v55_v15 = vld [vmem:[#allocation5] sm:$0xff]  ;;  %v53_v16 = vld [vmem:[#allocation2] sm:$0xff] }
  0x12   :  { %v54_v17 = vld [vmem:[#allocation2 + $0x8] sm:$0xff]  ;;  %v201_v18 = vld [vmem:[%s350_s2] ss:$0 sm:$0xff] }
  0x13   :  { %78 = vmatpush.msra.mxu0 %v67_v3  ;;  %183 = vmatpush.msra.mxu1 %v67_v3  ;;  %v202_v53 = vld [vmem:[%s351_s3] ss:$0 sm:$0xff]  ;;  %s164_s3 = sshll.u32 %s290_s8, 4  ;;  %s165_s3 = int_to_ptr.vmem [resolvable:$true] %s164_s3 }
  0x14   :  { %v203_v57 = vld [vmem:[%s352_s4] ss:$0 sm:$0xff] }
  0x15   :  { %79 = vmatpush.msra.mxu0 %v66_v4  ;;  %184 = vmatpush.msra.mxu1 %v66_v4 }
  0x17   :  { %80 = vmatpush.msra.mxu0 %v65_v5  ;;  %185 = vmatpush.msra.mxu1 %v65_v5 }
  0x19   :  { %81 = vmatpush.msra.mxu0 %v64_v6  ;;  %186 = vmatpush.msra.mxu1 %v64_v6 }
  0x1b   :  { %82 = vmatpush.msra.mxu0 %v63_v7  ;;  %187 = vmatpush.msra.mxu1 %v63_v7 }
  0x1d   :  { %83 = vmatpush.msra.mxu0 %v62_v8  ;;  %188 = vmatpush.msra.mxu1 %v62_v8 }
  0x1f   :  { %84 = vmatpush.msra.mxu0 %v61_v9  ;;  %189 = vmatpush.msra.mxu1 %v61_v9 }
  0x21   :  { %85 = vmatpush.msra.mxu0 %v60_v10  ;;  %190 = vmatpush.msra.mxu1 %v60_v10 }
  0x23   :  { %86 = vmatpush.msra.mxu0 %v59_v11  ;;  %191 = vmatpush.msra.mxu1 %v59_v11 }
  0x25   :  { %87 = vmatpush.msra.mxu0 %v58_v12  ;;  %192 = vmatpush.msra.mxu1 %v58_v12 }
  0x27   :  { %88 = vmatpush.msra.mxu0 %v57_v13  ;;  %193 = vmatpush.msra.mxu1 %v57_v13 }
  0x29   :  { %89 = vmatpush.msra.mxu0 %v56_v14  ;;  %194 = vmatpush.msra.mxu1 %v56_v14 }
  0x2b   :  { %90 = vmatpush.msra.mxu0 %v55_v15  ;;  %195 = vmatpush.msra.mxu1 %v55_v15 }
  0x2c   :  { %91 = vmatmul.f32.vlgmr.msra.gmra.mxu0 %v53_v16  ;;  %94 = vmatmul.f32.vlgmr.msra.gmra.mxu1 %v54_v17 }
  0xa9   :  { %v92_v19 = vpop.f32.mrf.mxu0  ;;  %v95_v21 = vpop.f32.mrf.mxu1 }
  0xaa   :  { %v93_v20 = vadd.f32 %v201_v18, %v92_v19  ;;  %v96_v22 = vadd.f32 %v201_v18, %v95_v21 }
  0xac   :  { %100 = vadd.xlane.f32.xlu0 %v93_v20 }
  0xb4   :  { %102 = vadd.xlane.f32.xlu0 %v96_v22 }
 0x11f   :  { %v101_v23 = vpop.xlane.xlu0 %100 }
 0x120   :  { %v104_v24 = vmul.f32 0.015625, %v101_v23 }
 0x122   :  { %v106_v25 = vsub.f32 %v93_v20, %v104_v24  ;;  %v114_v31 = vmul.f32 %v104_v24, %v104_v24 }
 0x124   :  { %v108_v26 = vmul.f32 %v106_v25, %v106_v25  ;;  %v116_v32 = vmul.f32 64.0, %v114_v31 }
 0x126   :  { %110 = vadd.xlane.f32.xlu1 %v108_v26 }
 0x127   :  { %v103_v27 = vpop.xlane.xlu0 %102 }
 0x128   :  { %v105_v28 = vmul.f32 0.015625, %v103_v27 }
 0x12a   :  { %v107_v29 = vsub.f32 %v96_v22, %v105_v28  ;;  %v115_v35 = vmul.f32 %v105_v28, %v105_v28 }
 0x12c   :  { %v109_v30 = vmul.f32 %v107_v29, %v107_v29  ;;  %v117_v38 = vmul.f32 64.0, %v115_v35 }
 0x12e   :  { %112 = vadd.xlane.f32.xlu1 %v109_v30 }
 0x199   :  { %v111_v33 = vpop.xlane.xlu1 %110 }
 0x19a   :  { %v118_v34 = vsub.f32 %v111_v33, %v116_v32 }
 0x19c   :  { %v120_v36 = vmul.f32 0.015625, %v118_v34 }
 0x19e   :  { %v122_v37 = vmax.f32 %v120_v36, 0.0 }
 0x1a0   :  { %v124_v39 = vadd.f32 1e-12, %v122_v37 }
 0x1a1   :  { %v113_v40 = vpop.xlane.xlu1 %112 }
 0x1a2   :  { %204 = vrsqrt.f32 %v124_v39  ;;  %v119_v41 = vsub.f32 %v113_v40, %v117_v38  ;;  %vm132_vm1 = vweird.f32 %v124_v39 }
 0x1a4   :  { %v121_v42 = vmul.f32 0.015625, %v119_v41 }
 0x1a6   :  { %v123_v43 = vmax.f32 %v121_v42, 0.0 }
 0x1a8   :  { %v205_v44 = vpop.eup %204  ;;  %v125_v45 = vadd.f32 1e-12, %v123_v43 }
 0x1a9   :  { %v127_v46 = vmul.f32 %v205_v44, %v124_v39  ;;  %vm133_vm0 = vweird.f32 %v205_v44 }
 0x1aa   :  { %206 = vrsqrt.f32 %v125_v45  ;;  %vm134_vm2 = vmor %vm132_vm1, %vm133_vm0  ;;  %vm142_vm4 = vweird.f32 %v125_v45 }
 0x1ab   :  { %v128_v47 = vmul.f32 %v205_v44, %v127_v46 }
 0x1ad   :  { %v129_v48 = vmul.f32 0.5, %v128_v47 }
 0x1af   :  { %v130_v49 = vsub.f32 1.5, %v129_v48 }
 0x1b0   :  { %v207_v50 = vpop.eup %206 }
 0x1b1   :  { %v131_v51 = vmul.f32 %v205_v44, %v130_v49  ;;  %v137_v52 = vmul.f32 %v207_v50, %v125_v45  ;;  %vm143_vm3 = vweird.f32 %v207_v50 }
 0x1b2   :  { %vm144_vm5 = vmor %vm142_vm4, %vm143_vm3 }
 0x1b3   :  { %v135_v54 = vsel %vm134_vm2, %v205_v44, %v131_v51  ;;  %v138_v55 = vmul.f32 %v207_v50, %v137_v52 }
 0x1b4   :  { %v146_v56 = vmul.f32 %v135_v54, %v106_v25 }
 0x1b5   :  { %v139_v58 = vmul.f32 0.5, %v138_v55 }
 0x1b6   :  { %v151_v59 = vmul.f32 %v202_v53, %v146_v56 }
 0x1b7   :  { %v140_v60 = vsub.f32 1.5, %v139_v58 }
 0x1b8   :  { %v156_v61 = vadd.f32 %v203_v57, %v151_v59 }
 0x1b9   :  { %v141_v62 = vmul.f32 %v207_v50, %v140_v60 }
 0x1ba   :  { %158 = vst [vmem:[#allocation7] sm:$0xff] %v156_v61 }
 0x1bb   :  { %v145_v63 = vsel %vm144_vm5, %v207_v50, %v141_v62 }
 0x1bc   :  { %v147_v0 = vmul.f32 %v145_v63, %v107_v29 }
 0x1be   :  { %v152_v1 = vmul.f32 %v202_v53, %v147_v0 }
 0x1c0   :  { %v157_v2 = vadd.f32 %v203_v57, %v152_v1 }
 0x1c2   :  { %159 = vst [vmem:[#allocation7 + $0x8] sm:$0xff] %v157_v2 }
 0x1c3   :  { %172 = dma.vmem_to_hbm [thread:$0]  %s165_s3, 256, %s167_s11, [#allocation4], %s287_s26, %s287_s26, %s288_s27  }
 0x1c4   :  { %284 = dma.done.wait [#allocation4], 256  }
 0x1c5   :  { %285 = vsyncadd [#allocation4], 4294967040 }
 0x1c6   :  { %177 = vsyncpa [#allocation3], 1 }
 0x1c7   :  { %178 = vsyncpa [#allocation6], 1 }
 0x1c8   :  { %179 = vsyncpa [#allocation4], 1 }

</bundles_post_ra>
